<compile_context>
chip_gen: v5e
topology: v5e:2x2
jax: 0.10.0
libtpu: 0.0.40
codegen_flags: <defaults>
</compile_context>

<pallas_src>
import functools
import numpy as np
import jax
import jax.numpy as jnp
from jax.experimental import pallas as pl
from jax.experimental.pallas import tpu as pltpu

DILATIONS = (2, 3, 5)


def _aspp_res_kernel(xt_ref, col_ref, bot1_ref, wc2_ref, wd_ref, wbot_ref, o_ref,
                     *, C, CB, NDIL):
    x = xt_ref[0]                                    # (C, TS) f32, lane-dense

    # --- ASPP branch 2: 1x1 conv + ReLU, exact f32 on the VPU (K = C is tiny) ---
    f2 = wc2_ref[0] * x[0:1, :]                      # (CB,1)*(1,TS) -> (CB,TS)
    for c in range(1, C):
        f2 = f2 + wc2_ref[c] * x[c:c + 1, :]
    feat2 = jnp.maximum(f2, 0.0)

    # --- bottleneck accumulator; fold feat2 through its 1x1 group immediately ---
    bot = wbot_ref[0, 0] * feat2[0:1, :]             # (C,1)*(1,TS) -> (C,TS)
    for cb in range(1, CB):
        bot = bot + wbot_ref[0, cb] * feat2[cb:cb + 1, :]

    # --- dilated 3x3x3 branches: one fused K=27*C bf16 MXU matmul per dilation ---
    for di in range(NDIL):
        f = jnp.dot(wd_ref[di], col_ref[0, di],
                    preferred_element_type=jnp.float32)   # (CB, TS), f32 accum
        f = jnp.maximum(f, 0.0)
        for cb in range(CB):                         # fold into bottleneck now
            bot = bot + wbot_ref[1 + di, cb] * f[cb:cb + 1, :]

    # --- + precomputed GAP-branch constant, bottleneck ReLU, residual, act ------
    bottle = jnp.maximum(bot + bot1_ref[0], 0.0)     # bot1_ref[0]: (C,1) broadcast
    o_ref[0] = jnp.maximum(bottle + x, 0.0)          # lane-dense (C, TS) store


def _pick_spatial_tile(S, bytes_per_pos, budget_bytes=4 << 20):
    """Largest multiple-of-128 divisor of S whose streamed block fits the budget."""
    if S < 128 or S % 128 != 0:
        return S
    cand = [t for t in range(128, S + 1, 128) if S % t == 0]
    fit = [t for t in cand if t * bytes_per_pos <= budget_bytes]
    return max(fit) if fit else min(cand)


def _pack_kernel_params(params):
    """PyTorch Conv3d layouts -> kernel layouts (channels-first, spatial-as-lanes)."""
    wgap_t, wc2_t, wd_t, wbot_t = params
    CB, C = wgap_t.shape[:2]
    ndil = len(DILATIONS)
    wgap = wgap_t[:, :, 0, 0, 0]                                           # (CB, C) f32
    wc2_k = jnp.transpose(wc2_t[:, :, 0, 0, 0])[:, :, None]                # (C, CB, 1) f32
    # (ndil, CB, C, kz, ky, kx) -> (ndil, CB, kz, ky, kx, C) -> (ndil, CB, 27*C), bf16
    wd_k = jnp.transpose(wd_t, (0, 1, 3, 4, 5, 2)).reshape(ndil, CB, 27 * C)
    wd_k = wd_k.astype(jnp.bfloat16)
    wbot_g = wbot_t[:, :, 0, 0, 0].reshape(wbot_t.shape[0], 2 + ndil, CB)  # (Cout,5,CB)
    wbot_gap = wbot_g[:, 0, :]                                             # (Cout, CB) f32
    wbot_k = jnp.transpose(wbot_g[:, 1:, :], (1, 2, 0))[..., None]         # (1+ndil,CB,Cout,1)
    return wgap, wc2_k, wd_k, wbot_gap, wbot_k


@jax.jit
def rev_res_chain_aspp_block(x_ncdhw, params):
    """x_ncdhw: (N, C, D, H, W) float32.  Returns (N, C, D, H, W) float32."""
    N, C, D, H, W = x_ncdhw.shape
    CB = C
    NDIL = len(DILATIONS)
    S = D * H * W
    PAD = max(DILATIONS)
    wgap, wc2_k, wd_k, wbot_gap, wbot_k = _pack_kernel_params(params)
    hi = jax.lax.Precision.HIGHEST

    # GAP branch precomputed (tiny (N, C) math; upsample of 1x1x1 == broadcast).
    gap = jnp.mean(x_ncdhw, axis=(2, 3, 4))                                # (N, C) f32
    feat1 = jax.nn.relu(jnp.einsum('nc,bc->nb', gap, wgap, precision=hi))  # (N, CB)
    bot1 = jnp.einsum('nb,ob->no', feat1, wbot_gap, precision=hi)[..., None]  # (N,C,1)

    # Wrapper-side im2col for the dilated convs (bf16, K index = tap*C + ci).
    xp = jnp.pad(x_ncdhw, ((0, 0), (0, 0), (PAD, PAD), (PAD, PAD), (PAD, PAD)))
    cols = []
    for d in DILATIONS:
        taps = [xp[:, :, PAD + dz:PAD + dz + D, PAD + dy:PAD + dy + H,
                   PAD + dx:PAD + dx + W]
                for dz in (-d, 0, d) for dy in (-d, 0, d) for dx in (-d, 0, d)]
        cols.append(jnp.stack(taps, axis=1).reshape(N, 27 * C, S))
    col = jnp.stack(cols, axis=1).astype(jnp.bfloat16)                     # (N,NDIL,27C,S)

    xt = x_ncdhw.reshape(N, C, S)                                          # lane-dense f32

    bytes_per_pos = NDIL * 27 * C * 2 + 2 * C * 4          # col (bf16) + x/out (f32)
    TS = _pick_spatial_tile(S, bytes_per_pos)
    grid = (N, S // TS)

    kernel = functools.partial(_aspp_res_kernel, C=C, CB=CB, NDIL=NDIL)
    out_flat = pl.pallas_call(
        kernel,
        out_shape=jax.ShapeDtypeStruct((N, C, S), jnp.float32),
        grid_spec=pltpu.PrefetchScalarGridSpec(
            num_scalar_prefetch=0,
            grid=grid,
            in_specs=[
                pl.BlockSpec((1, C, TS), lambda n, s: (n, 0, s)),
                pl.BlockSpec((1, NDIL, 27 * C, TS), lambda n, s: (n, 0, 0, s)),
                pl.BlockSpec((1, C, 1), lambda n, s: (n, 0, 0)),
                pl.BlockSpec((C, CB, 1), lambda n, s: (0, 0, 0)),
                pl.BlockSpec((NDIL, CB, 27 * C), lambda n, s: (0, 0, 0)),
                pl.BlockSpec((1 + NDIL, CB, C, 1), lambda n, s: (0, 0, 0, 0)),
            ],
            out_specs=pl.BlockSpec((1, C, TS), lambda n, s: (n, 0, s)),
        ),
        compiler_params=pltpu.CompilerParams(
            dimension_semantics=("parallel", "parallel")),
    )(xt, col, bot1, wc2_k, wd_k, wbot_k)

    return out_flat.reshape(N, C, D, H, W)


def init_params(key, C):
    """Deterministic synthetic weights in PyTorch Conv3d layout (O, I, kD, kH, kW)."""
    CB = C
    ndil = len(DILATIONS)
    k1, k2, k3, k4 = jax.random.split(key, 4)
    wgap_t = jax.random.normal(k1, (CB, C, 1, 1, 1), jnp.float32) * np.sqrt(2.0 / C)
    wc2_t = jax.random.normal(k2, (CB, C, 1, 1, 1), jnp.float32) * np.sqrt(2.0 / C)
    wd_t = jax.random.normal(k3, (ndil, CB, C, 3, 3, 3), jnp.float32) * np.sqrt(2.0 / (27 * C))
    wbot_t = jax.random.normal(k4, (C, (2 + ndil) * CB, 1, 1, 1),
                               jnp.float32) * np.sqrt(2.0 / ((2 + ndil) * CB))
    return wgap_t, wc2_t, wd_t, wbot_t


@jax.jit
def reference(x, params):
    """Plain-JAX reference (lax.conv_general_dilated) of the same math.
    The dilated branches use bf16-rounded inputs/weights to mirror the kernel's
    bf16 MXU matmuls (f32 accumulation in both)."""
    wgap_t, wc2_t, wd_t, wbot_t = params
    N, C, D, H, W = x.shape
    CB = wgap_t.shape[0]
    dn = jax.lax.conv_dimension_numbers(x.shape, wc2_t.shape,
                                        ('NCDHW', 'OIDHW', 'NCDHW'))
    hi = jax.lax.Precision.HIGHEST

    def conv(inp, w, dil, pad):
        return jax.lax.conv_general_dilated(
            inp, w, window_strides=(1, 1, 1), padding=[(pad, pad)] * 3,
            rhs_dilation=(dil, dil, dil), dimension_numbers=dn, precision=hi)

    r = lambda a: a.astype(jnp.bfloat16).astype(jnp.float32)

    gap = jnp.mean(x, axis=(2, 3, 4), keepdims=True)
    feat1 = jax.nn.relu(conv(gap, wgap_t, 1, 0))
    feat1 = jnp.broadcast_to(feat1, (N, CB, D, H, W))   # trilinear of 1x1x1 == const
    feat2 = jax.nn.relu(conv(x, wc2_t, 1, 0))
    feats = [feat1, feat2]
    for i, d in enumerate(DILATIONS):
        feats.append(jax.nn.relu(conv(r(x), r(wd_t[i]), d, d)))
    bottle = jax.nn.relu(conv(jnp.concatenate(feats, axis=1), wbot_t, 1, 0))
    return jax.nn.relu(bottle + x)


if __name__ == "__main__":
    key = jax.random.PRNGKey(0)
    kx, kp = jax.random.split(key)
    N, C, D, H, W = 2, 4, 8, 8, 8           # in_ch=4, 8^3 volume, batch 2
    x = jax.random.normal(kx, (N, C, D, H, W), jnp.float32)
    params = init_params(kp, C)

    out = jax.block_until_ready(rev_res_chain_aspp_block(x, params))
    ref = jax.block_until_ready(reference(x, params))

    np.testing.assert_allclose(np.asarray(out), np.asarray(ref), rtol=2e-3, atol=2e-3)
    assert out.shape == x.shape and out.dtype == jnp.float32
    print("KERNEL_OK")
</pallas_src>

<mosaic_0001>
module attributes {stable_mosaic.version = 11 : i64} {
  func.func @_aspp_res_kernel(%arg0: i32, %arg1: i32, %arg2: memref<1x4x512xf32, #tpu.memory_space<vmem>>, %arg3: memref<1x3x108x512xbf16, #tpu.memory_space<vmem>>, %arg4: memref<1x4x1xf32, #tpu.memory_space<vmem>>, %arg5: memref<4x4x1xf32, #tpu.memory_space<vmem>>, %arg6: memref<3x4x108xbf16, #tpu.memory_space<vmem>>, %arg7: memref<4x4x4x1xf32, #tpu.memory_space<vmem>>, %arg8: memref<1x4x512xf32, #tpu.memory_space<vmem>>) attributes {dimension_semantics = [#tpu.dimension_semantics<parallel>, #tpu.dimension_semantics<parallel>], iteration_bounds = array<i64: 2, 1>, scalar_prefetch = 0 : i64, scratch_operands = 0 : i64, tpu.core_type = #tpu.core_type<tc>, window_params = [{transform_indices = @transform_0, window_bounds = array<i64: 1, 4, 512>}, {transform_indices = @transform_1, window_bounds = array<i64: 1, 3, 108, 512>}, {transform_indices = @transform_2, window_bounds = array<i64: 1, 4, 1>}, {pipeline_mode = #tpu.pipeline_mode<synchronous>, transform_indices = @transform_3, window_bounds = array<i64: 4, 4, 1>}, {pipeline_mode = #tpu.pipeline_mode<synchronous>, transform_indices = @transform_4, window_bounds = array<i64: 3, 4, 108>}, {pipeline_mode = #tpu.pipeline_mode<synchronous>, transform_indices = @transform_5, window_bounds = array<i64: 4, 4, 4, 1>}, {transform_indices = @transform_6, window_bounds = array<i64: 1, 4, 512>}]} {
    %c0 = arith.constant 0 : index
    %c0_0 = arith.constant 0 : index
    %c0_1 = arith.constant 0 : index
    %0 = vector.load %arg2[%c0, %c0_0, %c0_1] : memref<1x4x512xf32, #tpu.memory_space<vmem>>, vector<1x4x512xf32>
    %1 = vector.shape_cast %0 : vector<1x4x512xf32> to vector<4x512xf32>
    %c0_2 = arith.constant 0 : index
    %c0_3 = arith.constant 0 : index
    %c0_4 = arith.constant 0 : index
    %2 = vector.load %arg5[%c0_2, %c0_3, %c0_4] : memref<4x4x1xf32, #tpu.memory_space<vmem>>, vector<1x4x1xf32>
    %3 = vector.shape_cast %2 : vector<1x4x1xf32> to vector<4x1xf32>
    %4 = vector.extract_strided_slice %1 {offsets = [0, 0], sizes = [1, 512], strides = [1, 1]} : vector<4x512xf32> to vector<1x512xf32>
    %5 = vector.broadcast %3 : vector<4x1xf32> to vector<4x512xf32>
    %6 = vector.broadcast %4 : vector<1x512xf32> to vector<4x512xf32>
    %7 = arith.mulf %5, %6 : vector<4x512xf32>
    %c1 = arith.constant 1 : index
    %c0_5 = arith.constant 0 : index
    %c0_6 = arith.constant 0 : index
    %8 = vector.load %arg5[%c1, %c0_5, %c0_6] : memref<4x4x1xf32, #tpu.memory_space<vmem>>, vector<1x4x1xf32>
    %9 = vector.shape_cast %8 : vector<1x4x1xf32> to vector<4x1xf32>
    %10 = vector.extract_strided_slice %1 {offsets = [1, 0], sizes = [1, 512], strides = [1, 1]} : vector<4x512xf32> to vector<1x512xf32>
    %11 = vector.broadcast %9 : vector<4x1xf32> to vector<4x512xf32>
    %12 = vector.broadcast %10 : vector<1x512xf32> to vector<4x512xf32>
    %13 = arith.mulf %11, %12 : vector<4x512xf32>
    %14 = arith.addf %7, %13 : vector<4x512xf32>
    %c2 = arith.constant 2 : index
    %c0_7 = arith.constant 0 : index
    %c0_8 = arith.constant 0 : index
    %15 = vector.load %arg5[%c2, %c0_7, %c0_8] : memref<4x4x1xf32, #tpu.memory_space<vmem>>, vector<1x4x1xf32>
    %16 = vector.shape_cast %15 : vector<1x4x1xf32> to vector<4x1xf32>
    %17 = vector.extract_strided_slice %1 {offsets = [2, 0], sizes = [1, 512], strides = [1, 1]} : vector<4x512xf32> to vector<1x512xf32>
    %18 = vector.broadcast %16 : vector<4x1xf32> to vector<4x512xf32>
    %19 = vector.broadcast %17 : vector<1x512xf32> to vector<4x512xf32>
    %20 = arith.mulf %18, %19 : vector<4x512xf32>
    %21 = arith.addf %14, %20 : vector<4x512xf32>
    %c3 = arith.constant 3 : index
    %c0_9 = arith.constant 0 : index
    %c0_10 = arith.constant 0 : index
    %22 = vector.load %arg5[%c3, %c0_9, %c0_10] : memref<4x4x1xf32, #tpu.memory_space<vmem>>, vector<1x4x1xf32>
    %23 = vector.shape_cast %22 : vector<1x4x1xf32> to vector<4x1xf32>
    %24 = vector.extract_strided_slice %1 {offsets = [3, 0], sizes = [1, 512], strides = [1, 1]} : vector<4x512xf32> to vector<1x512xf32>
    %25 = vector.broadcast %23 : vector<4x1xf32> to vector<4x512xf32>
    %26 = vector.broadcast %24 : vector<1x512xf32> to vector<4x512xf32>
    %27 = arith.mulf %25, %26 : vector<4x512xf32>
    %28 = arith.addf %21, %27 : vector<4x512xf32>
    %cst = arith.constant 0.000000e+00 : f32
    %29 = vector.broadcast %cst : f32 to vector<4x512xf32>
    %30 = arith.maximumf %28, %29 : vector<4x512xf32>
    %c0_11 = arith.constant 0 : index
    %c0_12 = arith.constant 0 : index
    %c0_13 = arith.constant 0 : index
    %c0_14 = arith.constant 0 : index
    %31 = vector.load %arg7[%c0_11, %c0_12, %c0_13, %c0_14] : memref<4x4x4x1xf32, #tpu.memory_space<vmem>>, vector<1x1x4x1xf32>
    %32 = vector.shape_cast %31 : vector<1x1x4x1xf32> to vector<4x1xf32>
    %33 = vector.extract_strided_slice %30 {offsets = [0, 0], sizes = [1, 512], strides = [1, 1]} : vector<4x512xf32> to vector<1x512xf32>
    %34 = vector.broadcast %32 : vector<4x1xf32> to vector<4x512xf32>
    %35 = vector.broadcast %33 : vector<1x512xf32> to vector<4x512xf32>
    %36 = arith.mulf %34, %35 : vector<4x512xf32>
    %c0_15 = arith.constant 0 : index
    %c1_16 = arith.constant 1 : index
    %c0_17 = arith.constant 0 : index
    %c0_18 = arith.constant 0 : index
    %37 = vector.load %arg7[%c0_15, %c1_16, %c0_17, %c0_18] : memref<4x4x4x1xf32, #tpu.memory_space<vmem>>, vector<1x1x4x1xf32>
    %38 = vector.shape_cast %37 : vector<1x1x4x1xf32> to vector<4x1xf32>
    %39 = vector.extract_strided_slice %30 {offsets = [1, 0], sizes = [1, 512], strides = [1, 1]} : vector<4x512xf32> to vector<1x512xf32>
    %40 = vector.broadcast %38 : vector<4x1xf32> to vector<4x512xf32>
    %41 = vector.broadcast %39 : vector<1x512xf32> to vector<4x512xf32>
    %42 = arith.mulf %40, %41 : vector<4x512xf32>
    %43 = arith.addf %36, %42 : vector<4x512xf32>
    %c0_19 = arith.constant 0 : index
    %c2_20 = arith.constant 2 : index
    %c0_21 = arith.constant 0 : index
    %c0_22 = arith.constant 0 : index
    %44 = vector.load %arg7[%c0_19, %c2_20, %c0_21, %c0_22] : memref<4x4x4x1xf32, #tpu.memory_space<vmem>>, vector<1x1x4x1xf32>
    %45 = vector.shape_cast %44 : vector<1x1x4x1xf32> to vector<4x1xf32>
    %46 = vector.extract_strided_slice %30 {offsets = [2, 0], sizes = [1, 512], strides = [1, 1]} : vector<4x512xf32> to vector<1x512xf32>
    %47 = vector.broadcast %45 : vector<4x1xf32> to vector<4x512xf32>
    %48 = vector.broadcast %46 : vector<1x512xf32> to vector<4x512xf32>
    %49 = arith.mulf %47, %48 : vector<4x512xf32>
    %50 = arith.addf %43, %49 : vector<4x512xf32>
    %c0_23 = arith.constant 0 : index
    %c3_24 = arith.constant 3 : index
    %c0_25 = arith.constant 0 : index
    %c0_26 = arith.constant 0 : index
    %51 = vector.load %arg7[%c0_23, %c3_24, %c0_25, %c0_26] : memref<4x4x4x1xf32, #tpu.memory_space<vmem>>, vector<1x1x4x1xf32>
    %52 = vector.shape_cast %51 : vector<1x1x4x1xf32> to vector<4x1xf32>
    %53 = vector.extract_strided_slice %30 {offsets = [3, 0], sizes = [1, 512], strides = [1, 1]} : vector<4x512xf32> to vector<1x512xf32>
    %54 = vector.broadcast %52 : vector<4x1xf32> to vector<4x512xf32>
    %55 = vector.broadcast %53 : vector<1x512xf32> to vector<4x512xf32>
    %56 = arith.mulf %54, %55 : vector<4x512xf32>
    %57 = arith.addf %50, %56 : vector<4x512xf32>
    %c0_27 = arith.constant 0 : index
    %c0_28 = arith.constant 0 : index
    %c0_29 = arith.constant 0 : index
    %58 = vector.load %arg6[%c0_27, %c0_28, %c0_29] : memref<3x4x108xbf16, #tpu.memory_space<vmem>>, vector<1x4x108xbf16>
    %59 = vector.shape_cast %58 : vector<1x4x108xbf16> to vector<4x108xbf16>
    %c0_30 = arith.constant 0 : index
    %c0_31 = arith.constant 0 : index
    %c0_32 = arith.constant 0 : index
    %c0_33 = arith.constant 0 : index
    %60 = vector.load %arg3[%c0_30, %c0_31, %c0_32, %c0_33] : memref<1x3x108x512xbf16, #tpu.memory_space<vmem>>, vector<1x1x108x512xbf16>
    %61 = vector.shape_cast %60 : vector<1x1x108x512xbf16> to vector<108x512xbf16>
    %cst_34 = arith.constant dense<0.000000e+00> : vector<4x512xf32>
    %62 = tpu.matmul %59, %61, %cst_34 {dimension_numbers = #tpu.dot_dimension_numbers<[1], [0], [0], [1], [0, 0, 1, 1], [], []>} : vector<4x108xbf16>, vector<108x512xbf16>, vector<4x512xf32> -> vector<4x512xf32>
    %cst_35 = arith.constant 0.000000e+00 : f32
    %63 = vector.broadcast %cst_35 : f32 to vector<4x512xf32>
    %64 = arith.maximumf %62, %63 : vector<4x512xf32>
    %c1_36 = arith.constant 1 : index
    %c0_37 = arith.constant 0 : index
    %c0_38 = arith.constant 0 : index
    %c0_39 = arith.constant 0 : index
    %65 = vector.load %arg7[%c1_36, %c0_37, %c0_38, %c0_39] : memref<4x4x4x1xf32, #tpu.memory_space<vmem>>, vector<1x1x4x1xf32>
    %66 = vector.shape_cast %65 : vector<1x1x4x1xf32> to vector<4x1xf32>
    %67 = vector.extract_strided_slice %64 {offsets = [0, 0], sizes = [1, 512], strides = [1, 1]} : vector<4x512xf32> to vector<1x512xf32>
    %68 = vector.broadcast %66 : vector<4x1xf32> to vector<4x512xf32>
    %69 = vector.broadcast %67 : vector<1x512xf32> to vector<4x512xf32>
    %70 = arith.mulf %68, %69 : vector<4x512xf32>
    %71 = arith.addf %57, %70 : vector<4x512xf32>
    %c1_40 = arith.constant 1 : index
    %c1_41 = arith.constant 1 : index
    %c0_42 = arith.constant 0 : index
    %c0_43 = arith.constant 0 : index
    %72 = vector.load %arg7[%c1_40, %c1_41, %c0_42, %c0_43] : memref<4x4x4x1xf32, #tpu.memory_space<vmem>>, vector<1x1x4x1xf32>
    %73 = vector.shape_cast %72 : vector<1x1x4x1xf32> to vector<4x1xf32>
    %74 = vector.extract_strided_slice %64 {offsets = [1, 0], sizes = [1, 512], strides = [1, 1]} : vector<4x512xf32> to vector<1x512xf32>
    %75 = vector.broadcast %73 : vector<4x1xf32> to vector<4x512xf32>
    %76 = vector.broadcast %74 : vector<1x512xf32> to vector<4x512xf32>
    %77 = arith.mulf %75, %76 : vector<4x512xf32>
    %78 = arith.addf %71, %77 : vector<4x512xf32>
    %c1_44 = arith.constant 1 : index
    %c2_45 = arith.constant 2 : index
    %c0_46 = arith.constant 0 : index
    %c0_47 = arith.constant 0 : index
    %79 = vector.load %arg7[%c1_44, %c2_45, %c0_46, %c0_47] : memref<4x4x4x1xf32, #tpu.memory_space<vmem>>, vector<1x1x4x1xf32>
    %80 = vector.shape_cast %79 : vector<1x1x4x1xf32> to vector<4x1xf32>
    %81 = vector.extract_strided_slice %64 {offsets = [2, 0], sizes = [1, 512], strides = [1, 1]} : vector<4x512xf32> to vector<1x512xf32>
    %82 = vector.broadcast %80 : vector<4x1xf32> to vector<4x512xf32>
    %83 = vector.broadcast %81 : vector<1x512xf32> to vector<4x512xf32>
    %84 = arith.mulf %82, %83 : vector<4x512xf32>
    %85 = arith.addf %78, %84 : vector<4x512xf32>
    %c1_48 = arith.constant 1 : index
    %c3_49 = arith.constant 3 : index
    %c0_50 = arith.constant 0 : index
    %c0_51 = arith.constant 0 : index
    %86 = vector.load %arg7[%c1_48, %c3_49, %c0_50, %c0_51] : memref<4x4x4x1xf32, #tpu.memory_space<vmem>>, vector<1x1x4x1xf32>
    %87 = vector.shape_cast %86 : vector<1x1x4x1xf32> to vector<4x1xf32>
    %88 = vector.extract_strided_slice %64 {offsets = [3, 0], sizes = [1, 512], strides = [1, 1]} : vector<4x512xf32> to vector<1x512xf32>
    %89 = vector.broadcast %87 : vector<4x1xf32> to vector<4x512xf32>
    %90 = vector.broadcast %88 : vector<1x512xf32> to vector<4x512xf32>
    %91 = arith.mulf %89, %90 : vector<4x512xf32>
    %92 = arith.addf %85, %91 : vector<4x512xf32>
    %c1_52 = arith.constant 1 : index
    %c0_53 = arith.constant 0 : index
    %c0_54 = arith.constant 0 : index
    %93 = vector.load %arg6[%c1_52, %c0_53, %c0_54] : memref<3x4x108xbf16, #tpu.memory_space<vmem>>, vector<1x4x108xbf16>
    %94 = vector.shape_cast %93 : vector<1x4x108xbf16> to vector<4x108xbf16>
    %c0_55 = arith.constant 0 : index
    %c1_56 = arith.constant 1 : index
    %c0_57 = arith.constant 0 : index
    %c0_58 = arith.constant 0 : index
    %95 = vector.load %arg3[%c0_55, %c1_56, %c0_57, %c0_58] : memref<1x3x108x512xbf16, #tpu.memory_space<vmem>>, vector<1x1x108x512xbf16>
    %96 = vector.shape_cast %95 : vector<1x1x108x512xbf16> to vector<108x512xbf16>
    %cst_59 = arith.constant dense<0.000000e+00> : vector<4x512xf32>
    %97 = tpu.matmul %94, %96, %cst_59 {dimension_numbers = #tpu.dot_dimension_numbers<[1], [0], [0], [1], [0, 0, 1, 1], [], []>} : vector<4x108xbf16>, vector<108x512xbf16>, vector<4x512xf32> -> vector<4x512xf32>
    %cst_60 = arith.constant 0.000000e+00 : f32
    %98 = vector.broadcast %cst_60 : f32 to vector<4x512xf32>
    %99 = arith.maximumf %97, %98 : vector<4x512xf32>
    %c2_61 = arith.constant 2 : index
    %c0_62 = arith.constant 0 : index
    %c0_63 = arith.constant 0 : index
    %c0_64 = arith.constant 0 : index
    %100 = vector.load %arg7[%c2_61, %c0_62, %c0_63, %c0_64] : memref<4x4x4x1xf32, #tpu.memory_space<vmem>>, vector<1x1x4x1xf32>
    %101 = vector.shape_cast %100 : vector<1x1x4x1xf32> to vector<4x1xf32>
    %102 = vector.extract_strided_slice %99 {offsets = [0, 0], sizes = [1, 512], strides = [1, 1]} : vector<4x512xf32> to vector<1x512xf32>
    %103 = vector.broadcast %101 : vector<4x1xf32> to vector<4x512xf32>
    %104 = vector.broadcast %102 : vector<1x512xf32> to vector<4x512xf32>
    %105 = arith.mulf %103, %104 : vector<4x512xf32>
    %106 = arith.addf %92, %105 : vector<4x512xf32>
    %c2_65 = arith.constant 2 : index
    %c1_66 = arith.constant 1 : index
    %c0_67 = arith.constant 0 : index
    %c0_68 = arith.constant 0 : index
    %107 = vector.load %arg7[%c2_65, %c1_66, %c0_67, %c0_68] : memref<4x4x4x1xf32, #tpu.memory_space<vmem>>, vector<1x1x4x1xf32>
    %108 = vector.shape_cast %107 : vector<1x1x4x1xf32> to vector<4x1xf32>
    %109 = vector.extract_strided_slice %99 {offsets = [1, 0], sizes = [1, 512], strides = [1, 1]} : vector<4x512xf32> to vector<1x512xf32>
    %110 = vector.broadcast %108 : vector<4x1xf32> to vector<4x512xf32>
    %111 = vector.broadcast %109 : vector<1x512xf32> to vector<4x512xf32>
    %112 = arith.mulf %110, %111 : vector<4x512xf32>
    %113 = arith.addf %106, %112 : vector<4x512xf32>
    %c2_69 = arith.constant 2 : index
    %c2_70 = arith.constant 2 : index
    %c0_71 = arith.constant 0 : index
    %c0_72 = arith.constant 0 : index
    %114 = vector.load %arg7[%c2_69, %c2_70, %c0_71, %c0_72] : memref<4x4x4x1xf32, #tpu.memory_space<vmem>>, vector<1x1x4x1xf32>
    %115 = vector.shape_cast %114 : vector<1x1x4x1xf32> to vector<4x1xf32>
    %116 = vector.extract_strided_slice %99 {offsets = [2, 0], sizes = [1, 512], strides = [1, 1]} : vector<4x512xf32> to vector<1x512xf32>
    %117 = vector.broadcast %115 : vector<4x1xf32> to vector<4x512xf32>
    %118 = vector.broadcast %116 : vector<1x512xf32> to vector<4x512xf32>
    %119 = arith.mulf %117, %118 : vector<4x512xf32>
    %120 = arith.addf %113, %119 : vector<4x512xf32>
    %c2_73 = arith.constant 2 : index
    %c3_74 = arith.constant 3 : index
    %c0_75 = arith.constant 0 : index
    %c0_76 = arith.constant 0 : index
    %121 = vector.load %arg7[%c2_73, %c3_74, %c0_75, %c0_76] : memref<4x4x4x1xf32, #tpu.memory_space<vmem>>, vector<1x1x4x1xf32>
    %122 = vector.shape_cast %121 : vector<1x1x4x1xf32> to vector<4x1xf32>
    %123 = vector.extract_strided_slice %99 {offsets = [3, 0], sizes = [1, 512], strides = [1, 1]} : vector<4x512xf32> to vector<1x512xf32>
    %124 = vector.broadcast %122 : vector<4x1xf32> to vector<4x512xf32>
    %125 = vector.broadcast %123 : vector<1x512xf32> to vector<4x512xf32>
    %126 = arith.mulf %124, %125 : vector<4x512xf32>
    %127 = arith.addf %120, %126 : vector<4x512xf32>
    %c2_77 = arith.constant 2 : index
    %c0_78 = arith.constant 0 : index
    %c0_79 = arith.constant 0 : index
    %128 = vector.load %arg6[%c2_77, %c0_78, %c0_79] : memref<3x4x108xbf16, #tpu.memory_space<vmem>>, vector<1x4x108xbf16>
    %129 = vector.shape_cast %128 : vector<1x4x108xbf16> to vector<4x108xbf16>
    %c0_80 = arith.constant 0 : index
    %c2_81 = arith.constant 2 : index
    %c0_82 = arith.constant 0 : index
    %c0_83 = arith.constant 0 : index
    %130 = vector.load %arg3[%c0_80, %c2_81, %c0_82, %c0_83] : memref<1x3x108x512xbf16, #tpu.memory_space<vmem>>, vector<1x1x108x512xbf16>
    %131 = vector.shape_cast %130 : vector<1x1x108x512xbf16> to vector<108x512xbf16>
    %cst_84 = arith.constant dense<0.000000e+00> : vector<4x512xf32>
    %132 = tpu.matmul %129, %131, %cst_84 {dimension_numbers = #tpu.dot_dimension_numbers<[1], [0], [0], [1], [0, 0, 1, 1], [], []>} : vector<4x108xbf16>, vector<108x512xbf16>, vector<4x512xf32> -> vector<4x512xf32>
    %cst_85 = arith.constant 0.000000e+00 : f32
    %133 = vector.broadcast %cst_85 : f32 to vector<4x512xf32>
    %134 = arith.maximumf %132, %133 : vector<4x512xf32>
    %c3_86 = arith.constant 3 : index
    %c0_87 = arith.constant 0 : index
    %c0_88 = arith.constant 0 : index
    %c0_89 = arith.constant 0 : index
    %135 = vector.load %arg7[%c3_86, %c0_87, %c0_88, %c0_89] : memref<4x4x4x1xf32, #tpu.memory_space<vmem>>, vector<1x1x4x1xf32>
    %136 = vector.shape_cast %135 : vector<1x1x4x1xf32> to vector<4x1xf32>
    %137 = vector.extract_strided_slice %134 {offsets = [0, 0], sizes = [1, 512], strides = [1, 1]} : vector<4x512xf32> to vector<1x512xf32>
    %138 = vector.broadcast %136 : vector<4x1xf32> to vector<4x512xf32>
    %139 = vector.broadcast %137 : vector<1x512xf32> to vector<4x512xf32>
    %140 = arith.mulf %138, %139 : vector<4x512xf32>
    %141 = arith.addf %127, %140 : vector<4x512xf32>
    %c3_90 = arith.constant 3 : index
    %c1_91 = arith.constant 1 : index
    %c0_92 = arith.constant 0 : index
    %c0_93 = arith.constant 0 : index
    %142 = vector.load %arg7[%c3_90, %c1_91, %c0_92, %c0_93] : memref<4x4x4x1xf32, #tpu.memory_space<vmem>>, vector<1x1x4x1xf32>
    %143 = vector.shape_cast %142 : vector<1x1x4x1xf32> to vector<4x1xf32>
    %144 = vector.extract_strided_slice %134 {offsets = [1, 0], sizes = [1, 512], strides = [1, 1]} : vector<4x512xf32> to vector<1x512xf32>
    %145 = vector.broadcast %143 : vector<4x1xf32> to vector<4x512xf32>
    %146 = vector.broadcast %144 : vector<1x512xf32> to vector<4x512xf32>
    %147 = arith.mulf %145, %146 : vector<4x512xf32>
    %148 = arith.addf %141, %147 : vector<4x512xf32>
    %c3_94 = arith.constant 3 : index
    %c2_95 = arith.constant 2 : index
    %c0_96 = arith.constant 0 : index
    %c0_97 = arith.constant 0 : index
    %149 = vector.load %arg7[%c3_94, %c2_95, %c0_96, %c0_97] : memref<4x4x4x1xf32, #tpu.memory_space<vmem>>, vector<1x1x4x1xf32>
    %150 = vector.shape_cast %149 : vector<1x1x4x1xf32> to vector<4x1xf32>
    %151 = vector.extract_strided_slice %134 {offsets = [2, 0], sizes = [1, 512], strides = [1, 1]} : vector<4x512xf32> to vector<1x512xf32>
    %152 = vector.broadcast %150 : vector<4x1xf32> to vector<4x512xf32>
    %153 = vector.broadcast %151 : vector<1x512xf32> to vector<4x512xf32>
    %154 = arith.mulf %152, %153 : vector<4x512xf32>
    %155 = arith.addf %148, %154 : vector<4x512xf32>
    %c3_98 = arith.constant 3 : index
    %c3_99 = arith.constant 3 : index
    %c0_100 = arith.constant 0 : index
    %c0_101 = arith.constant 0 : index
    %156 = vector.load %arg7[%c3_98, %c3_99, %c0_100, %c0_101] : memref<4x4x4x1xf32, #tpu.memory_space<vmem>>, vector<1x1x4x1xf32>
    %157 = vector.shape_cast %156 : vector<1x1x4x1xf32> to vector<4x1xf32>
    %158 = vector.extract_strided_slice %134 {offsets = [3, 0], sizes = [1, 512], strides = [1, 1]} : vector<4x512xf32> to vector<1x512xf32>
    %159 = vector.broadcast %157 : vector<4x1xf32> to vector<4x512xf32>
    %160 = vector.broadcast %158 : vector<1x512xf32> to vector<4x512xf32>
    %161 = arith.mulf %159, %160 : vector<4x512xf32>
    %162 = arith.addf %155, %161 : vector<4x512xf32>
    %c0_102 = arith.constant 0 : index
    %c0_103 = arith.constant 0 : index
    %c0_104 = arith.constant 0 : index
    %163 = vector.load %arg4[%c0_102, %c0_103, %c0_104] : memref<1x4x1xf32, #tpu.memory_space<vmem>>, vector<1x4x1xf32>
    %164 = vector.shape_cast %163 : vector<1x4x1xf32> to vector<4x1xf32>
    %165 = vector.broadcast %164 : vector<4x1xf32> to vector<4x512xf32>
    %166 = arith.addf %162, %165 : vector<4x512xf32>
    %cst_105 = arith.constant 0.000000e+00 : f32
    %167 = vector.broadcast %cst_105 : f32 to vector<4x512xf32>
    %168 = arith.maximumf %166, %167 : vector<4x512xf32>
    %169 = arith.addf %168, %1 : vector<4x512xf32>
    %cst_106 = arith.constant 0.000000e+00 : f32
    %170 = vector.broadcast %cst_106 : f32 to vector<4x512xf32>
    %171 = arith.maximumf %169, %170 : vector<4x512xf32>
    %c0_107 = arith.constant 0 : index
    %c0_108 = arith.constant 0 : index
    %c0_109 = arith.constant 0 : index
    %172 = vector.load %arg8[%c0_107, %c0_108, %c0_109] : memref<1x4x512xf32, #tpu.memory_space<vmem>>, vector<1x4x512xf32>
    %173 = vector.shape_cast %172 : vector<1x4x512xf32> to vector<4x512xf32>
    %174 = vector.shape_cast %171 : vector<4x512xf32> to vector<1x4x512xf32>
    tpu.vector_store %arg8[%c0_107, %c0_108, %c0_109], %174 {strides = array<i32>} : memref<1x4x512xf32, #tpu.memory_space<vmem>>, vector<1x4x512xf32>,
    return
  }
  func.func @transform_0(%arg0: i32, %arg1: i32) -> (i32, i32, i32) {
    %c0_i32 = arith.constant 0 : i32
    %c0_i32_0 = arith.constant 0 : i32
    return %arg0, %c0_i32, %arg1 : i32, i32, i32
  }
  func.func @transform_1(%arg0: i32, %arg1: i32) -> (i32, i32, i32, i32) {
    %c0_i32 = arith.constant 0 : i32
    %c0_i32_0 = arith.constant 0 : i32
    %c0_i32_1 = arith.constant 0 : i32
    return %arg0, %c0_i32, %c0_i32_0, %arg1 : i32, i32, i32, i32
  }
  func.func @transform_2(%arg0: i32, %arg1: i32) -> (i32, i32, i32) {
    %c0_i32 = arith.constant 0 : i32
    %c0_i32_0 = arith.constant 0 : i32
    %c0_i32_1 = arith.constant 0 : i32
    return %arg0, %c0_i32, %c0_i32_0 : i32, i32, i32
  }
  func.func @transform_3(%arg0: i32, %arg1: i32) -> (i32, i32, i32) {
    %c0_i32 = arith.constant 0 : i32
    %c0_i32_0 = arith.constant 0 : i32
    %c0_i32_1 = arith.constant 0 : i32
    %c0_i32_2 = arith.constant 0 : i32
    return %c0_i32, %c0_i32_0, %c0_i32_1 : i32, i32, i32
  }
  func.func @transform_4(%arg0: i32, %arg1: i32) -> (i32, i32, i32) {
    %c0_i32 = arith.constant 0 : i32
    %c0_i32_0 = arith.constant 0 : i32
    %c0_i32_1 = arith.constant 0 : i32
    %c0_i32_2 = arith.constant 0 : i32
    return %c0_i32, %c0_i32_0, %c0_i32_1 : i32, i32, i32
  }
  func.func @transform_5(%arg0: i32, %arg1: i32) -> (i32, i32, i32, i32) {
    %c0_i32 = arith.constant 0 : i32
    %c0_i32_0 = arith.constant 0 : i32
    %c0_i32_1 = arith.constant 0 : i32
    %c0_i32_2 = arith.constant 0 : i32
    %c0_i32_3 = arith.constant 0 : i32
    return %c0_i32, %c0_i32_0, %c0_i32_1, %c0_i32_2 : i32, i32, i32, i32
  }
  func.func @transform_6(%arg0: i32, %arg1: i32) -> (i32, i32, i32) {
    %c0_i32 = arith.constant 0 : i32
    %c0_i32_0 = arith.constant 0 : i32
    return %arg0, %c0_i32, %arg1 : i32, i32, i32
  }
}

</mosaic_0001>

<bundles_post_ra>
// kernel: squeeze.6
= control target key start
LH: loop header
LB: loop body
LE: loop exit
PB: predicated region body
PF: predicated region fallthrough
CT: control target
= control target key end

     0   :  { %s42_s8 = smov 124   ;;  %s43_s9 = smov 112   ;;  %vm7_vm0 = vcmask 31744   ;;  %s73_s0 = inlined_call_operand.vmem [shape: f32[4,20], index: 0, kind: input, shape index: {}]   ;;  %s74_s1 = inlined_call_operand.vmem [shape: f32[4,5,4], index: 1, kind: output, shape index: {}]  }
   0x1   :  { %v4_v0 = vld [vmem:[%s73_s0] sm:$0xf]  ;;  %s41_s0 = smov 116   ;;  %s44_s10 = smov 120  }
   0x2   :  { %5 = vst [vmem:[#allocation0] sm:$0xf] %v4_v0 }
   0x9   :  { %v21_v1 = vld [vmem:[#allocation0] sm:$0xf]  }
   0xa   :  { %v9_v2 = vld [vmem:[#allocation0] sm:$0xf]   ;;  %22 = vrot.lane.b32.xlu1 %v21_v1, %s41_s0 }
   0xb   :  { %10 = vrot.lane.b32.xlu0 %v9_v2, %s42_s8  ;;  %v27_v3 = vld [vmem:[#allocation0] sm:$0xf]  }
   0xc   :  { %v15_v4 = vld [vmem:[#allocation0] sm:$0xf]  }
   0xd   :  { %v6_v5 = vld [vmem:[#allocation0] sm:$0xf]  }
   0xe   :  { %8 = vst.msk [vmem:[%s74_s1] ss:$8 sm:$0xf] %vm7_vm0, %v6_v5  }
  0x12   :  { %28 = vrot.lane.b32.xlu1 %v27_v3, %s43_s9 }
  0x13   :  { %16 = vrot.lane.b32.xlu0 %v15_v4, %s44_s10 }
  0x7c   :  { %v23_v6 = vpop.permute.xlu1 %22  }
  0x7d   :  { %v11_v7 = vpop.permute.xlu0 %10   ;;  %35 = vst.msk [vmem:[%s74_s1 + $0x3] ss:$8 sm:$0xf] %vm7_vm0, %v23_v6  }
  0x7e   :  { %33 = vst.msk [vmem:[%s74_s1 + $0x1] ss:$8 sm:$0xf] %vm7_vm0, %v11_v7  }
  0x84   :  { %v29_v8 = vpop.permute.xlu1 %28  }
  0x85   :  { %v17_v9 = vpop.permute.xlu0 %16   ;;  %36 = vst.msk [vmem:[%s74_s1 + $0x4] ss:$8 sm:$0xf] %vm7_vm0, %v29_v8  }
  0x86   :  { %34 = vst.msk [vmem:[%s74_s1 + $0x2] ss:$8 sm:$0xf] %vm7_vm0, %v17_v9  }

</bundles_post_ra>
